<compile_context>
chip_gen: v7x
topology: tpu7x:2x2x1
jax: 0.10.0
libtpu: 0.0.40
codegen_flags: <defaults>
</compile_context>

<pallas_src>
import functools

import jax
import jax.numpy as jnp
import numpy as np
from jax.experimental import pallas as pl
from jax.experimental.pallas import tpu as pltpu


# --------------------------------- kernels -----------------------------------
def _matmul_bias_kernel(x_ref, w_ref, b_ref, o_ref, *, compute_dtype):
    """No-shift path: out = x @ w + b for one (1, TN, D) tile."""
    xs = x_ref[0].astype(compute_dtype)                          # (TN, D)
    y = jnp.dot(xs, w_ref[...], preferred_element_type=jnp.float32)
    o_ref[0] = (y + b_ref[...]).astype(o_ref.dtype)              # bias add in f32


def _shift_matmul_bias_kernel(x_ref, halo_ref, w_ref, b_ref, o_ref, *,
                              amount, compute_dtype):
    """Token shift (static `amount` along seq) fused with Linear(D, Dout).

    x_ref   : (1, TN, D)  current sequence tile (8-row aligned load, untouched)
    halo_ref: (1, H,  D)  8-row-aligned neighbour block holding the |amount|
              rows that cross the seq-tile boundary.
    """
    nt = pl.program_id(1)
    tn = x_ref.shape[1]
    h = halo_ref.shape[1]
    a = abs(amount)

    # Main body: aligned full-tile load, sublane roll on the XLU (no relayouting
    # concatenate), one full-tile MXU matmul.  Rows that wrapped around during the
    # roll are overwritten by the boundary fix below.
    xs = pltpu.roll(x_ref[0].astype(compute_dtype), shift=amount % tn, axis=0)
    y = jnp.dot(xs, w_ref[...], preferred_element_type=jnp.float32)
    o_ref[0] = (y + b_ref[...]).astype(o_ref.dtype)

    # Boundary fix: the |amount| rows that cross the tile boundary come from the
    # halo block; at the global sequence boundary they are exact zeros (F.pad).
    edge = halo_ref[0].astype(compute_dtype)                     # (H, D), aligned
    ey = jnp.dot(edge, w_ref[...], preferred_element_type=jnp.float32)  # (H, Dout)
    if amount > 0:
        at_boundary = nt == 0
        rows = ey[h - a:, :]                                     # -> out rows [0, a)
    else:
        at_boundary = nt == pl.num_programs(1) - 1
        rows = ey[:a, :]                                         # -> out rows [TN-a, TN)
    rows = jnp.where(at_boundary, 0.0, rows) + b_ref[...]        # exact zero fill
    if amount > 0:
        o_ref[0, :a, :] = rows.astype(o_ref.dtype)
    else:
        o_ref[0, tn - a:, :] = rows.astype(o_ref.dtype)


# ------------------------------ tiling helpers --------------------------------
_VMEM_BUDGET = 32 << 20     # tile-selection budget (safe on v5e/v6e/v7x)
_VMEM_CAP = 64 << 20        # never request more scoped VMEM than v7x physical


def _pick_tile_dout(dout, target=512):
    """Largest multiple-of-128 output tile <= target dividing Dout (else Dout)."""
    if dout <= target or dout % 128 != 0:
        return dout
    for td in range(target - target % 128, 0, -128):
        if dout % td == 0:
            return td
    return dout


def _pick_tile_n(n, amount, row_bytes, fixed_bytes, budget, target=2048):
    """Largest multiple-of-8 seq tile dividing n that fits the VMEM budget."""
    if n % 8 != 0:
        return n
    hi = min(n, target)
    hi -= hi % 8
    for tn in range(hi, 0, -8):
        if n % tn != 0 or tn <= abs(amount):
            continue
        if fixed_bytes + tn * row_bytes <= budget:
            return tn
    # Nothing under budget: fall back to the smallest legal divisor.
    for tn in range(8, n + 1, 8):
        if n % tn == 0 and tn > abs(amount):
            return tn
    return n


def _pick_halo(tile_n, amount):
    """Smallest multiple-of-8 halo >= |amount| whose blocks tile `tile_n`."""
    a = abs(amount)
    h = max(8, ((a + 7) // 8) * 8)
    while h < tile_n and tile_n % h != 0:
        h += 8
    return min(h, tile_n)


# --------------------------------- wrapper ------------------------------------
def pre_shift_tokens_linear(x, w, b, shifts, *, tile_n=None, tile_dout=None,
                            compute_dtype=jnp.float32, out_dtype=None):
    """Pallas PreShiftTokens(shifts, fn=Linear(D, Dout)); shift fused with matmul.

    compute_dtype=jnp.float32 matches the PyTorch reference; pass jnp.bfloat16 to
    use the bf16 MXU path (f32 accumulation).  out_dtype defaults to x.dtype;
    pass jnp.bfloat16 to halve HBM writeback on memory-bound configs (v5e).
    """
    shifts = tuple(shifts)
    B, N, D = x.shape
    Dw, Dout = w.shape
    assert Dw == D
    out_dtype = x.dtype if out_dtype is None else out_dtype

    if shifts == (0.0,):
        amount = 0
    else:
        # torch: x.split(x.shape[-1], dim=-1) -> ONE chunk, so only shifts[0] applies.
        amount = int(shifts[0])

    if amount != 0 and abs(amount) >= N:
        # Everything is shifted out: fn(0) = bias broadcast (degenerate case).
        bias = b.reshape(1, 1, Dout).astype(jnp.float32)
        return jnp.broadcast_to(bias, (B, N, Dout)).astype(out_dtype)

    x_item = x.dtype.itemsize
    c_item = jnp.dtype(compute_dtype).itemsize
    o_item = jnp.dtype(out_dtype).itemsize

    if tile_dout is None:
        tile_dout = _pick_tile_dout(Dout)
    assert Dout % tile_dout == 0
    n_dout = Dout // tile_dout

    halo_est = max(8, ((abs(amount) + 7) // 8) * 8) if amount != 0 else 0
    fixed_bytes = (2 * D * tile_dout * c_item        # weight tile (double-buffered)
                   + 2 * tile_dout * 4               # bias
                   + 2 * halo_est * D * x_item)      # halo blocks
    row_bytes = 2 * D * x_item + 2 * tile_dout * o_item
    if tile_n is None:
        tile_n = _pick_tile_n(N, amount, row_bytes, fixed_bytes, _VMEM_BUDGET)
    assert N % tile_n == 0, "tile_n must divide the sequence length"
    if amount != 0:
        assert abs(amount) < tile_n, "|shift| must be smaller than the seq tile"
    n_tiles = N // tile_n

    w_in = w.astype(compute_dtype)                 # cast once; block stays resident
    b_in = b.reshape(1, Dout).astype(jnp.float32)  # bias stays in f32

    x_spec = pl.BlockSpec((1, tile_n, D), lambda bi, ni, di: (bi, ni, 0))
    w_spec = pl.BlockSpec((D, tile_dout), lambda bi, ni, di: (0, di))
    b_spec = pl.BlockSpec((1, tile_dout), lambda bi, ni, di: (0, di))
    o_spec = pl.BlockSpec((1, tile_n, tile_dout), lambda bi, ni, di: (bi, ni, di))

    if amount == 0:
        kernel = functools.partial(_matmul_bias_kernel, compute_dtype=compute_dtype)
        in_specs = [x_spec, w_spec, b_spec]
        operands = (x, w_in, b_in)
        halo = 0
    else:
        halo = _pick_halo(tile_n, amount)
        bpt = tile_n // halo
        n_halo_blocks = N // halo
        if amount > 0:
            # halo = H-block ending at this tile's first row (clamped at tile 0).
            halo_map = lambda bi, ni, di: (bi, jnp.maximum(ni * bpt - 1, 0), 0)
        else:
            # halo = H-block starting at the next tile (clamped at the last tile).
            halo_map = lambda bi, ni, di: (
                bi, jnp.minimum((ni + 1) * bpt, n_halo_blocks - 1), 0)
        halo_spec = pl.BlockSpec((1, halo, D), halo_map)
        kernel = functools.partial(_shift_matmul_bias_kernel, amount=amount,
                                   compute_dtype=compute_dtype)
        in_specs = [x_spec, halo_spec, w_spec, b_spec]
        operands = (x, x, w_in, b_in)

    vmem_needed = (2 * tile_n * D * x_item
                   + 2 * tile_n * tile_dout * o_item
                   + 2 * D * tile_dout * c_item
                   + 2 * tile_dout * 4
                   + 2 * halo * D * x_item)
    vmem_limit = int(min(max(vmem_needed * 5 // 4 + (2 << 20), 16 << 20), _VMEM_CAP))

    cost = pl.CostEstimate(
        flops=2 * B * N * D * Dout,
        transcendentals=0,
        bytes_accessed=(B * N * D * x_item + D * Dout * c_item + Dout * 4
                        + B * N * Dout * o_item))

    return pl.pallas_call(
        kernel,
        out_shape=jax.ShapeDtypeStruct((B, N, Dout), out_dtype),
        grid=(B, n_tiles, n_dout),
        in_specs=in_specs,
        out_specs=o_spec,
        compiler_params=pltpu.CompilerParams(
            dimension_semantics=("parallel", "parallel", "arbitrary"),
            vmem_limit_bytes=vmem_limit),
        cost_estimate=cost,
    )(*operands)


# ----------------------------- pure-JAX reference ------------------------------
def _ref_shift(t, amount):
    # mirrors F.pad(t, (0, 0, amount, -amount), value=0.0) on (B, N, D)
    if amount == 0:
        return t
    n = t.shape[1]
    if abs(amount) >= n:
        return jnp.zeros_like(t)
    if amount > 0:
        return jnp.concatenate(
            [jnp.zeros_like(t[:, :amount]), t[:, : n - amount]], axis=1)
    a = -amount
    return jnp.concatenate([t[:, a:], jnp.zeros_like(t[:, :a])], axis=1)


def _ref_pre_shift_tokens_linear(x, w, b, shifts, compute_dtype=jnp.float32):
    shifts = tuple(shifts)
    if shifts != (0.0,):
        x = _ref_shift(x, int(shifts[0]))
    y = jnp.dot(x.astype(compute_dtype), w.astype(compute_dtype),
                preferred_element_type=jnp.float32)
    y = y + b.reshape(1, 1, -1).astype(jnp.float32)
    return y.astype(x.dtype)


# ------------------------------------ test -------------------------------------
if __name__ == "__main__":
    key = jax.random.PRNGKey(0)
    kx, kw, kb = jax.random.split(key, 3)

    def check(x, w, b, shifts, rtol=1e-4, atol=1e-4, **kwargs):
        out = jax.block_until_ready(
            pre_shift_tokens_linear(x, w, b, shifts, **kwargs))
        ref = _ref_pre_shift_tokens_linear(
            x, w, b, shifts,
            compute_dtype=kwargs.get("compute_dtype", jnp.float32))
        np.testing.assert_allclose(np.asarray(out), np.asarray(ref),
                                   rtol=rtol, atol=atol)

    # Module-native small shapes: batch=2, seq=8, hidden=32.
    B, N, D = 2, 8, 32
    x = jax.random.normal(kx, (B, N, D), dtype=jnp.float32)
    w = jax.random.normal(kw, (D, D), dtype=jnp.float32) * 0.05
    b = jax.random.normal(kb, (D,), dtype=jnp.float32) * 0.01

    check(x, w, b, (1,))       # positive token shift
    check(x, w, b, (-3,))      # negative token shift
    check(x, w, b, (0.0,))     # no-shift fast path (fn applied directly)

    # Moderate lane-dense shapes exercising seq tiling (halo crosses tile
    # boundaries), Dout tiling, and the opt-in bf16 MXU path.
    B2, N2, D2, O2 = 2, 256, 128, 256
    x2 = jax.random.normal(jax.random.PRNGKey(1), (B2, N2, D2), dtype=jnp.float32)
    w2 = jax.random.normal(jax.random.PRNGKey(2), (D2, O2), dtype=jnp.float32) * 0.05
    b2 = jax.random.normal(jax.random.PRNGKey(3), (O2,), dtype=jnp.float32) * 0.01

    check(x2, w2, b2, (1,), tile_n=128, tile_dout=128)
    check(x2, w2, b2, (-5,), tile_n=128, tile_dout=128)
    check(x2, w2, b2, (2,), rtol=5e-3, atol=5e-3,
          tile_n=128, tile_dout=128, compute_dtype=jnp.bfloat16)

    print("KERNEL_OK")
</pallas_src>

<mosaic_0001>
module attributes {stable_mosaic.version = 11 : i64} {
  func.func @_shift_matmul_bias_kernel(%arg0: i32, %arg1: i32, %arg2: i32, %arg3: memref<1x8x32xf32, #tpu.memory_space<vmem>>, %arg4: memref<1x8x32xf32, #tpu.memory_space<vmem>>, %arg5: memref<32x32xf32, #tpu.memory_space<vmem>>, %arg6: memref<1x32xf32, #tpu.memory_space<vmem>>, %arg7: memref<1x8x32xf32, #tpu.memory_space<vmem>>) attributes {dimension_semantics = [#tpu.dimension_semantics<parallel>, #tpu.dimension_semantics<parallel>, #tpu.dimension_semantics<arbitrary>], iteration_bounds = array<i64: 2, 1, 1>, scalar_prefetch = 0 : i64, scratch_operands = 0 : i64, tpu.core_type = #tpu.core_type<tc>, window_params = [{transform_indices = @transform_0, window_bounds = array<i64: 1, 8, 32>}, {transform_indices = @transform_1, window_bounds = array<i64: 1, 8, 32>}, {transform_indices = @transform_2, window_bounds = array<i64: 32, 32>}, {transform_indices = @transform_3, window_bounds = array<i64: 1, 32>}, {transform_indices = @transform_4, window_bounds = array<i64: 1, 8, 32>}]} {
    %c0 = arith.constant 0 : index
    %c0_0 = arith.constant 0 : index
    %c0_1 = arith.constant 0 : index
    %0 = vector.load %arg3[%c0, %c0_0, %c0_1] : memref<1x8x32xf32, #tpu.memory_space<vmem>>, vector<1x8x32xf32>
    %1 = vector.shape_cast %0 : vector<1x8x32xf32> to vector<8x32xf32>
    %c1_i32 = arith.constant 1 : i32
    %2 = tpu.dynamic_rotate %1 by %c1_i32 dim 0 : vector<8x32xf32>, i32 -> vector<8x32xf32>
    %c0_2 = arith.constant 0 : index
    %c0_3 = arith.constant 0 : index
    %3 = vector.load %arg5[%c0_2, %c0_3] : memref<32x32xf32, #tpu.memory_space<vmem>>, vector<32x32xf32>
    %cst = arith.constant dense<0.000000e+00> : vector<8x32xf32>
    %4 = tpu.matmul %2, %3, %cst {dimension_numbers = #tpu.dot_dimension_numbers<[1], [0], [0], [1], [0, 0, 1, 1], [], []>} : vector<8x32xf32>, vector<32x32xf32>, vector<8x32xf32> -> vector<8x32xf32>
    %c0_4 = arith.constant 0 : index
    %c0_5 = arith.constant 0 : index
    %5 = vector.load %arg6[%c0_4, %c0_5] : memref<1x32xf32, #tpu.memory_space<vmem>>, vector<1x32xf32>
    %6 = vector.broadcast %5 : vector<1x32xf32> to vector<8x32xf32>
    %7 = arith.addf %4, %6 : vector<8x32xf32>
    %c0_6 = arith.constant 0 : index
    %c0_7 = arith.constant 0 : index
    %c0_8 = arith.constant 0 : index
    %8 = vector.load %arg7[%c0_6, %c0_7, %c0_8] : memref<1x8x32xf32, #tpu.memory_space<vmem>>, vector<1x8x32xf32>
    %9 = vector.shape_cast %8 : vector<1x8x32xf32> to vector<8x32xf32>
    %10 = vector.shape_cast %7 : vector<8x32xf32> to vector<1x8x32xf32>
    tpu.vector_store %arg7[%c0_6, %c0_7, %c0_8], %10 {strides = array<i32>} : memref<1x8x32xf32, #tpu.memory_space<vmem>>, vector<1x8x32xf32>,
    %c0_9 = arith.constant 0 : index
    %c0_10 = arith.constant 0 : index
    %c0_11 = arith.constant 0 : index
    %11 = vector.load %arg4[%c0_9, %c0_10, %c0_11] : memref<1x8x32xf32, #tpu.memory_space<vmem>>, vector<1x8x32xf32>
    %12 = vector.shape_cast %11 : vector<1x8x32xf32> to vector<8x32xf32>
    %c0_12 = arith.constant 0 : index
    %c0_13 = arith.constant 0 : index
    %13 = vector.load %arg5[%c0_12, %c0_13] : memref<32x32xf32, #tpu.memory_space<vmem>>, vector<32x32xf32>
    %cst_14 = arith.constant dense<0.000000e+00> : vector<8x32xf32>
    %14 = tpu.matmul %12, %13, %cst_14 {dimension_numbers = #tpu.dot_dimension_numbers<[1], [0], [0], [1], [0, 0, 1, 1], [], []>} : vector<8x32xf32>, vector<32x32xf32>, vector<8x32xf32> -> vector<8x32xf32>
    %c0_i32 = arith.constant 0 : i32
    %15 = arith.cmpi eq, %arg1, %c0_i32 : i32
    %16 = vector.extract_strided_slice %14 {offsets = [7, 0], sizes = [1, 32], strides = [1, 1]} : vector<8x32xf32> to vector<1x32xf32>
    %cst_15 = arith.constant 0.000000e+00 : f32
    %17 = vector.broadcast %cst_15 : f32 to vector<1x32xf32>
    %18 = arith.select %15, %17, %16 : vector<1x32xf32>
    %c0_16 = arith.constant 0 : index
    %c0_17 = arith.constant 0 : index
    %19 = vector.load %arg6[%c0_16, %c0_17] : memref<1x32xf32, #tpu.memory_space<vmem>>, vector<1x32xf32>
    %20 = arith.addf %18, %19 : vector<1x32xf32>
    %c0_18 = arith.constant 0 : index
    %c0_19 = arith.constant 0 : index
    %c0_20 = arith.constant 0 : index
    %21 = vector.load %arg7[%c0_18, %c0_19, %c0_20] : memref<1x8x32xf32, #tpu.memory_space<vmem>>, vector<1x1x32xf32>
    %22 = vector.shape_cast %21 : vector<1x1x32xf32> to vector<1x32xf32>
    %23 = vector.shape_cast %20 : vector<1x32xf32> to vector<1x1x32xf32>
    tpu.vector_store %arg7[%c0_18, %c0_19, %c0_20], %23 {strides = array<i32>} : memref<1x8x32xf32, #tpu.memory_space<vmem>>, vector<1x1x32xf32>,
    return
  }
  func.func @transform_0(%arg0: i32, %arg1: i32, %arg2: i32) -> (i32, i32, i32) {
    %c0_i32 = arith.constant 0 : i32
    %c0_i32_0 = arith.constant 0 : i32
    return %arg0, %arg1, %c0_i32 : i32, i32, i32
  }
  func.func @transform_1(%arg0: i32, %arg1: i32, %arg2: i32) -> (i32, i32, i32) {
    %c1_i32 = arith.constant 1 : i32
    %0 = arith.muli %arg1, %c1_i32 : i32
    %c1_i32_0 = arith.constant 1 : i32
    %1 = arith.subi %0, %c1_i32_0 : i32
    %c0_i32 = arith.constant 0 : i32
    %2 = arith.maxsi %1, %c0_i32 : i32
    %c0_i32_1 = arith.constant 0 : i32
    %c0_i32_2 = arith.constant 0 : i32
    return %arg0, %2, %c0_i32_1 : i32, i32, i32
  }
  func.func @transform_2(%arg0: i32, %arg1: i32, %arg2: i32) -> (i32, i32) {
    %c0_i32 = arith.constant 0 : i32
    %c0_i32_0 = arith.constant 0 : i32
    return %c0_i32, %arg2 : i32, i32
  }
  func.func @transform_3(%arg0: i32, %arg1: i32, %arg2: i32) -> (i32, i32) {
    %c0_i32 = arith.constant 0 : i32
    %c0_i32_0 = arith.constant 0 : i32
    return %c0_i32, %arg2 : i32, i32
  }
  func.func @transform_4(%arg0: i32, %arg1: i32, %arg2: i32) -> (i32, i32, i32) {
    %c0_i32 = arith.constant 0 : i32
    return %arg0, %arg1, %arg2 : i32, i32, i32
  }
}

</mosaic_0001>

<bundles_post_ra>
// kernel: tpu_custom_call.1
= control target key start
LH: loop header
LB: loop body
LE: loop exit
PB: predicated region body
PF: predicated region fallthrough
CT: control target
= control target key end

     0   :  { %s1275_s0 = inlined_call_operand.hbm [shape: f32[2,8,32], index: 0, kind: input, shape index: {}]   ;;  %s1276_s1 = inlined_call_operand.hbm [shape: f32[2,8,32], index: 1, kind: input, shape index: {}]   ;;  %s1277_s2 = inlined_call_operand.hbm [shape: f32[32,32], index: 2, kind: input, shape index: {}]   ;;  %s1278_s3 = inlined_call_operand.vmem [shape: f32[1,32], index: 3, kind: input, shape index: {}]   ;;  %s1279_s4 = inlined_call_operand.hbm [shape: f32[2,8,32], index: 4, kind: output, shape index: {}]  }
   0x1   :  { %1286 = sst [smem:[#allocation15_spill]] %s1277_s2 }
   0x2   :  { %9 = vsyncpa [#allocation3], 0 }
   0x3   :  { %11 = vsyncpa [#allocation3 + $0x1], 0 }
   0x4   :  { %12 = vsyncpa [#allocation6], 0 }
   0x5   :  { %14 = vsyncpa [#allocation6 + $0x1], 0 }
   0x6   :  { %15 = vsyncpa [#allocation4], 0 }
   0x7   :  { %17 = vsyncpa [#allocation4 + $0x1], 0  ;;  %s1018_s15 = smov 0   ;;  %s1020_s16 = smov 0  }
   0x8   :  { %s1022_s17 = smov 0   ;;  %s1024_s18 = smov 0  }
   0x9   :  { %s1026_s19 = smov 0   ;;  %s1028_s20 = smov 0  }
   0xa LB: > { %1287 = sst [smem:[#allocation13_spill]] %s978_s19  ;;  %s1049_s21 = sadd.s32 4294967295, %s982_s20   ;;  %s982_s20 = sphi %s1028_s20, %s23_s20   ;;  %s978_s19 = sphi %s1026_s19, %s1306_s19   ;;  %s974_s18 = sphi %s1024_s18, %s1305_s18   ;;  %s970_s17 = sphi %s1022_s17, %s1309_s17   ;;  %s966_s16 = sphi %s1020_s16, %s1308_s16   ;;  %s962_s15 = sphi %s1018_s15, %s1307_s15  }
   0xb   : > { %s655_s22 = sadd.s32 4294967294, %s982_s20   ;;  %p64_p0 = scmp.ne.s32.totalorder %s966_s16, %s962_s15 }
   0xc   : > { %p1280_p1 = scmp.eq.s32.totalorder %s1049_s21, 0  ;;  %p184_p3 = scmp.eq.s32.totalorder %s655_s22, 1 }
   0xd   : > { %p656_p5 = scmp.ge.s32.totalorder %s982_s20, 1  ;;  %p191_p7 = scmp.lt.s32.totalorder %s982_s20, 3 }
   0xe   : > { %p1058_p4 = por %p1280_p1, %p64_p0  ;;  %p1063_p6 = por %p184_p3, %p64_p0 }
   0xf   : > { %p1068_p8 = pnand %p656_p5, %p191_p7  ;;  %s984_s26 = smov [#allocation7]  }
  0x10   : > { %s1288_s23 = scalar_select %p1058_p4, 1, 0 }
  0x11   : > { %s1289_s24 = scalar_select %p1063_p6, 1, 0 }
  0x12   : > { %s1290_s25 = scalar_select %p1068_p8, 1, 0 }
  0x13   : > { %s205_s27 = sshll.u32 %s984_s26, 4  ;;  %p731_p9 = pneg %p1068_p8  ;;  %s206_s27 = int_to_ptr.vmem [resolvable:$true] %s205_s27 }
  0x14   : > { %s42_s29 = sadd.s32 1, %s978_s19  ;;  %s1292_s2 = sld [smem:[#allocation15_spill]] }
  0x15   : > { %p1077_p11 = pnand %p731_p9, %p1280_p1 }
  0x17   : > { %p806_p13 = pneg %p1077_p11 }
  0x1a   : > { %s804_s6 = scalar_lea.hbm %s1292_s2, 512 }
  0x1b   : > { %p805_p12 = scmp.ne.s32.totalorder %s1292_s2, %s804_s6  ;;  %p811_p5 = scmp.lt.u32.totalorder %s804_s6, %s1292_s2 }
  0x1d   : > { %p807_p0 = pnand %p806_p13, %p805_p12 }
  0x1f   : > { %p808_p3 = pneg %p807_p0 }
  0x21   : > { %p813_p7 = pnand %p811_p5, %p808_p3 }
  0x23   : > { %816 = shalt.err (!%p813_p7)
}
  0x24   : > { %s817_s11 = scalar_lea.vmem %s206_s27, 512  ;;  %p825_p2 = scmp.lt.s32.totalorder %s206_s27, %s206_s27 }
  0x25   : > { %p818_p9 = scmp.ne.s32.totalorder %s206_s27, %s817_s11  ;;  %p826_p6 = scmp.lt.s32.totalorder %s817_s11, %s817_s11 }
  0x27   : > { %p820_p10 = pnand %p818_p9, %p806_p13  ;;  %p827_p4 = por %p826_p6, %p825_p2 }
  0x29   : > { %p821_p1 = pneg %p820_p10 }
  0x2b   : > { %p828_p8 = pnand %p827_p4, %p821_p1 }
  0x2d   : > { %831 = shalt.err (!%p828_p8)
}
  0x2e   : > { %s985_s12 = smov 128   ;;  %s986_s13 = smov 8  }
  0x2f   : > { %734 = dma.hbm_to_vmem [thread:$0]  (!%p1077_p11), %s1292_s2, 512, %s206_s27, [#allocation6], %s985_s12, %s985_s12, %s986_s13  }
  0x30   : > { %p44_p1 = scmp.ge.s32.totalorder %s42_s29, 2  ;;  %s51_s26 = sadd.s32 1, %s970_s17 }
  0x31   : > { %p58_p2 = scmp.ne.s32.totalorder %s970_s17, %s966_s16  ;;  %p59_p4 = scmp.eq.s32.totalorder %s982_s20, 0 }
  0x32   : > { %s1311_s29 = smov (%p44_p1, %s42_s29), 0  ;;  %p1295_p8 = scmp.eq.s32.totalorder %s1049_s21, 1 }
  0x33   : > { %1293 = sst [smem:[#allocation14_spill]] %s1311_s29  ;;  %p1104_p6 = por %p59_p4, %p58_p2 }
  0x34   : > { %p1110_p10 = por %p1295_p8, %p58_p2  ;;  %s46_s5 = ssub.s32 %s978_s19, %s1311_s29 }
  0x35   : > { %p747_p11 = scmp.lt.s32.totalorder %s982_s20, 2  ;;  %p49_p12 = scmp.eq.s32.totalorder %s46_s5, 0 }
  0x36   : > { %s1296_s28 = scalar_select %p1110_p10, 1, 0 }
  0x37   : > { %s225_s27 = sand.u32 1, %s970_s17   ;;  %s661_s8 = sshll.u32 %s978_s19, 7 }
  0x38   : > { %s1118_s6 = sshll.u32 %s225_s27, 3  ;;  %s1127_s11 = scalar_lea.hbm %s1275_s0, %s661_s8 }
  0x39   : > { %s1121_s7 = scalar_select %p49_p12, %s970_s17, %s51_s26  }
  0x3a   : > { %s229_s12 = scalar_lea.vmem [#allocation2], %s1118_s6  ;;  %p1134_p13 = pnand %p747_p11, %p1104_p6 }
  0x3b   : > { %s237_s13 = sshll.u32 %s229_s12, 4  ;;  %s1141_s5 = scalar_lea.hbm %s1276_s1, %s661_s8  ;;  %s1130_s13 = int_to_ptr.vmem [resolvable:$true] %s237_s13 }
  0x3c   : > { %s244_s9 = sand.u32 1, %s982_s20   ;;  %s226_s10 = scalar_lea.sflag [#allocation3], %s225_s27 }
  0x3d   : > { %s832_s2 = scalar_lea.hbm %s1127_s11, 128  ;;  %p834_p3 = pneg %p1134_p13 }
  0x3e   : > { %p833_p0 = scmp.ne.s32.totalorder %s1127_s11, %s832_s2  ;;  %s837_s29 = scalar_lea.hbm %s1275_s0, 256 }
  0x3f   : > { %p838_p9 = scmp.lt.u32.totalorder %s1127_s11, %s1275_s0  ;;  %p839_p1 = scmp.lt.u32.totalorder %s837_s29, %s832_s2 }
  0x40   : > { %p835_p5 = pnand %p834_p3, %p833_p0  ;;  %p841_p4 = scmp.lt.u32.totalorder %s832_s2, %s1127_s11 }
  0x41   : > { %p840_p2 = por %p839_p1, %p838_p9 }
  0x42   : > { %p836_p7 = pneg %p835_p5 }
  0x43   : > { %p842_p6 = por %p841_p4, %p840_p2 }
  0x45   : > { %p843_p8 = pnand %p842_p6, %p836_p7 }
  0x47   : > { %846 = shalt.err (!%p843_p8)
}
  0x48   : > { %s847_s27 = scalar_lea.vmem %s1130_s13, 128  ;;  %s987_s8 = smov [#allocation2]  }
  0x49   : > { %p848_p11 = scmp.ne.s32.totalorder %s1130_s13, %s847_s27  ;;  %s852_s26 = sshll.u32 %s987_s8, 4  ;;  %s853_s26 = int_to_ptr.vmem [resolvable:$false] %s852_s26 }
  0x4a   : > { %s854_s19 = scalar_lea.vmem %s853_s26, 256  ;;  %p855_p5 = scmp.lt.s32.totalorder %s1130_s13, %s853_s26 }
  0x4b   : > { %p850_p12 = pnand %p848_p11, %p834_p3  ;;  %p856_p9 = scmp.lt.s32.totalorder %s854_s19, %s847_s27 }
  0x4d   : > { %p851_p0 = pneg %p850_p12  ;;  %p857_p1 = por %p856_p9, %p855_p5 }
  0x4f   : > { %p858_p2 = pnand %p857_p1, %p851_p0 }
  0x51   : > { %861 = shalt.err (!%p858_p2)
}
  0x52   : > { %738 = dma.hbm_to_vmem [thread:$0]  (!%p1134_p13), %s1127_s11, 128, %s1130_s13, %s226_s10  }
  0x53   : > { %s248_s2 = scalar_lea.vmem [#allocation5], %s1118_s6  ;;  %s245_s30 = scalar_lea.sflag [#allocation6], %s244_s9 }
  0x54   : > { %s259_s29 = sshll.u32 %s248_s2, 4  ;;  %s862_s12 = scalar_lea.hbm %s1141_s5, 128  ;;  %s260_s29 = int_to_ptr.vmem [resolvable:$true] %s259_s29 }
  0x55   : > { %p863_p7 = scmp.ne.s32.totalorder %s1141_s5, %s862_s12  ;;  %s867_s8 = scalar_lea.hbm %s1276_s1, 256 }
  0x56   : > { %p868_p8 = scmp.lt.u32.totalorder %s1141_s5, %s1276_s1  ;;  %p869_p11 = scmp.lt.u32.totalorder %s867_s8, %s862_s12 }
  0x57   : > { %p865_p4 = pnand %p863_p7, %p834_p3  ;;  %p871_p0 = scmp.lt.u32.totalorder %s862_s12, %s1141_s5 }
  0x58   : > { %p870_p12 = por %p869_p11, %p868_p8 }
  0x59   : > { %p866_p6 = pneg %p865_p4 }
  0x5a   : > { %p872_p5 = por %p871_p0, %p870_p12 }
  0x5c   : > { %p873_p9 = pnand %p872_p5, %p866_p6 }
  0x5e   : > { %876 = shalt.err (!%p873_p9)
}
  0x5f   : > { %s877_s6 = scalar_lea.vmem %s260_s29, 128  ;;  %s988_s11 = smov [#allocation5]  }
  0x60   : > { %p878_p1 = scmp.ne.s32.totalorder %s260_s29, %s877_s6  ;;  %s882_s13 = sshll.u32 %s988_s11, 4  ;;  %s883_s13 = int_to_ptr.vmem [resolvable:$false] %s882_s13 }
  0x61   : > { %s884_s9 = scalar_lea.vmem %s883_s13, 256  ;;  %p885_p4 = scmp.lt.s32.totalorder %s260_s29, %s883_s13 }
  0x62   : > { %p880_p2 = pnand %p878_p1, %p834_p3  ;;  %p886_p10 = scmp.lt.s32.totalorder %s884_s9, %s877_s6 }
  0x64   : > { %p881_p7 = pneg %p880_p2  ;;  %p887_p8 = por %p886_p10, %p885_p4 }
  0x66   : > { %p888_p11 = pnand %p887_p8, %p881_p7 }
  0x68   : > { %891 = shalt.err (!%p888_p11)
}
  0x69   : > { %741 = dma.hbm_to_vmem [thread:$0]  (!%p1134_p13), %s1141_s5, 128, %s260_s29, %s245_s30  }
  0x6a   : > { %p1298_p6 = scmp.ne.s32.totalorder %s1290_s25, 0 }
  0x6b   : > { %s1194_s10 = sand.u32 (!%p1298_p6), 1, %s966_s16   ;;  %p1299_p10 = scmp.ne.s32.totalorder (!%p1298_p6), %s1288_s23, 0 }
  0x6c   : > { %268 = sbr.rel (%p1298_p6) target bundleno = 361 (0x169), region = 36  ;;  %s1197_s2 = sshll.u32 (!%p1298_p6), %s1194_s10, 3 }
  0x6d   : > { %s271_s12 = scalar_lea.sflag (!%p1298_p6), [#allocation3], %s1194_s10  ;;  %s274_s22 = scalar_lea.vmem (!%p1298_p6), [#allocation2], %s1197_s2 }
  0x73   : > { %945 = dma.done.wait (%p1299_p10), %s271_s12, 128  }
  0x74   : > { %947 = vsyncadd (%p1299_p10), %s271_s12, 4294967168  ;;  %s279_s25 = sand.u32 1, %s1049_s21   ;;  %s283_s5 = scalar_lea.vmem [#allocation5], %s1197_s2 }
  0x75   : > { %s280_s14 = scalar_lea.sflag [#allocation6], %s279_s25 }
  0x76   : > { %949 = dma.done.wait (%p1299_p10), %s280_s14, 128  }
  0x77   : > { %951 = vsyncadd (%p1299_p10), %s280_s14, 4294967168  ;;  %p1300_p13 = scmp.eq.s32.totalorder %s1049_s21, 0 }
  0x79   : > { %953 = dma.done.wait (%p1300_p13), [#allocation6], 512   ;;  %p1301_p3 = pmov %p1300_p13 }
  0x7a   : > { %v989_v0 = vmov 0.0|0.0   ;;  %vm990_vm0 = vmmov 0   ;;  %v991_v1 = vmov 0.0   ;;  %v328_v2 = vld [vmem:[#allocation7] sm:$0xff]  ;;  %v329_v3 = vld [vmem:[#allocation7 + $0x8] sm:$0xff]  ;;  %v330_v4 = vld [vmem:[#allocation7 + $0x10] sm:$0xff] }
  0x7b   : > { %955 = vsyncadd (%p1301_p3), [#allocation6], 4294966784  ;;  %709 = vmatprep.subr.bf16.mxu0 %v989_v0  ;;  %715 = vmatprep.subr.bf16.mxu1 %v989_v0  ;;  %v710_v5 = vpack.c.bf16 %v329_v3, %v328_v2  ;;  %v331_v6 = vld [vmem:[#allocation7 + $0x18] sm:$0xff]  ;;  %v326_v8 = vld [vmem:[%s274_s22] sm:$0xff]  ;;  %vm339_vm1 = vcmask 261120   ;;  %s674_s29 = sshll.u32 %s974_s18, 7 }
  0x7c   : > { %695 = vmatprep.mubr.msk.f32.mxu0 %vm990_vm0, %v991_v1  ;;  %706 = vmatprep.mubr.msk.f32.mxu1 %vm990_vm0, %v991_v1  ;;  %v713_v7 = vpack.c.bf16 %v331_v6, %v330_v4  ;;  %v327_v9 = vrot.slane %v326_v8, 7  ;;  %v414_v10 = vld [vmem:[%s283_s5] sm:$0xff]  ;;  %v669_v11 = vld [vmem:[%s1278_s3] ss:$0 sm:$0xff]  ;;  %s319_s30 = scalar_lea.vmem [#allocation8], %s1197_s2  ;;  %vm505_vm2 = vcmask 261127   ;;  %s1225_s19 = scalar_lea.hbm %s1279_s4, %s674_s29 }
  0x7d   : > { %711 = vmatpush3.bf16.msra.mxu0 %v710_v5  ;;  %717 = vmatpush3.bf16.msra.mxu1 %v710_v5  ;;  %s523_s27 = sshll.u32 %s319_s30, 4  ;;  %s508_s18 = scalar_lea.sflag [#allocation4], %s1194_s10  ;;  %s1227_s27 = int_to_ptr.vmem [resolvable:$true] %s523_s27 }
  0x7e   : > { %712 = vmatprep.subr.bf16.mxu0 %v989_v0  ;;  %718 = vmatprep.subr.bf16.mxu1 %v989_v0  ;;  %s892_s6 = scalar_lea.vmem %s1227_s27, 128  ;;  %p1302_p0 = scmp.ne.s32.totalorder %s1296_s28, 0 }
  0x7f   : > { %p893_p12 = scmp.ne.s32.totalorder %s1227_s27, %s892_s6  ;;  %s992_s11 = smov [#allocation8]  }
  0x80   : > { %s896_s13 = sshll.u32 %s992_s11, 4  ;;  %s897_s13 = int_to_ptr.vmem [resolvable:$false] %s896_s13 }
  0x81   : > { %714 = vmatpush3.bf16.msra.mxu0 %v713_v7  ;;  %720 = vmatpush3.bf16.msra.mxu1 %v713_v7  ;;  %p894_p5 = pnand %p893_p12, %p1302_p0  ;;  %s898_s9 = scalar_lea.vmem %s897_s13, 256 }
  0x82   : > { %p899_p1 = scmp.lt.s32.totalorder %s1227_s27, %s897_s13  ;;  %p900_p2 = scmp.lt.s32.totalorder %s898_s9, %s892_s6 }
  0x83   : > { %p895_p9 = pneg %p894_p5 }
  0x84   : > { %696 = vmatmul.mubr.msk.f32.vlgmr.msra.gmra.mrb[0].mxu0 %vm339_vm1, %v327_v9  ;;  %707 = vmatmul.mubr.msk.f32.vlgmr.msra.gmra.mrb[0].mxu1 %vm339_vm1, %v414_v10  ;;  %p901_p7 = por %p900_p2, %p899_p1 }
  0x86   : > { %p902_p4 = pnand %p901_p7, %p895_p9 }
 0x157   : > { %v409_v12 = vpop.f32.mrb[0].mxu0  ;;  %v488_v13 = vpop.f32.mrb[0].mxu1 }
 0x158   : > { %v410_v14 = vadd.f32 %v669_v11, %v409_v12  ;;  %v697_v15 = vpop.f32.mrb[1].mxu0  ;;  %v708_v16 = vpop.f32.mrb[1].mxu1 }
 0x15a   : > { %413 = vst.msk [vmem:[%s319_s30] sm:$0xff] %vm339_vm1, %v410_v14 }
 0x15b   : > { %506 = vst.msk [vmem:[%s319_s30 - $0x7] sm:$0x80] %vm505_vm2, %v669_v11 }
 0x15c   : > { %905 = shalt.err (!%p902_p4)
}
 0x15d   : > { %s906_s10 = scalar_lea.hbm %s1225_s19, 128  ;;  %s910_s22 = scalar_lea.hbm %s1279_s4, 256 }
 0x15e   : > { %p907_p8 = scmp.ne.s32.totalorder %s1225_s19, %s906_s10  ;;  %p911_p10 = scmp.lt.u32.totalorder %s1225_s19, %s1279_s4 }
 0x15f   : > { %p912_p13 = scmp.lt.u32.totalorder %s910_s22, %s906_s10  ;;  %p914_p12 = scmp.lt.u32.totalorder %s906_s10, %s1225_s19 }
 0x160   : > { %p908_p11 = pnand %p907_p8, %p1302_p0 }
 0x161   : > { %p913_p3 = por %p912_p13, %p911_p10 }
 0x162   : > { %p909_p6 = pneg %p908_p11 }
 0x163   : > { %p915_p5 = por %p914_p12, %p913_p3 }
 0x165   : > { %p916_p9 = pnand %p915_p5, %p909_p6 }
 0x167   : > { %919 = shalt.err (!%p916_p9)
}
 0x168   : > { %729 = dma.vmem_to_hbm [thread:$0]  (%p1302_p0), %s1227_s27, 128, %s1225_s19, %s508_s18  }
 0x169 PF: > { %s535_s5 = sand.u32 1, %s962_s15   ;;  %p1303_p1 = scmp.ne.s32.totalorder %s1289_s24, 0 }
 0x16a   : > { %p1304_p2 = scmp.ge.s32.totalorder %s982_s20, 2  ;;  %s536_s21 = scalar_lea.sflag [#allocation4], %s535_s5 }
 0x16c   : > { %p743_p7 = pnand %p1304_p2, %p1303_p1 }
 0x16e   : > { %957 = dma.done.wait (!%p743_p7), %s536_s21, 128  }
 0x16f   : > { %959 = vsyncadd (!%p743_p7), %s536_s21, 4294967168  ;;  %s23_s20 = sadd.s32 1, %s982_s20   ;;  %s1305_s18 = sld [smem:[#allocation13_spill]] }
 0x170   : > { %p20_p4 = scmp.ge.s32.totalorder %s23_s20, 4   ;;  %s1306_s19 = sld [smem:[#allocation14_spill]] }
 0x171   : > { %s1307_s15 = smov %s966_s16  ;;  %s1308_s16 = smov %s970_s17 }
 0x172   : > { %s1309_s17 = smov %s1121_s7  ;;  %22 = sbr.rel (!%p20_p4) target bundleno = 10 (0xa), region = 102 }
 0x179   :  { %541 = vsyncpa [#allocation3], 1 }
 0x17a   :  { %543 = vsyncpa [#allocation3 + $0x1], 1 }
 0x17b   :  { %544 = vsyncpa [#allocation6], 1 }
 0x17c   :  { %546 = vsyncpa [#allocation6 + $0x1], 1 }
 0x17d   :  { %547 = vsyncpa [#allocation4], 1 }
 0x17e   :  { %549 = vsyncpa [#allocation4 + $0x1], 1 }

</bundles_post_ra>
